<compile_context>
chip_gen: v6e
topology: v6e:2x2x1
jax: 0.10.0
libtpu: 0.0.40
codegen_flags: <defaults>
</compile_context>

<pallas_src>
import jax
import jax.numpy as jnp
from jax.experimental import pallas as pl
from jax.experimental.pallas import tpu as pltpu


def _fused_conv2x_relu_kernel(x_ref, m1_ref, b1_ref, m2_ref, b2_ref, o_ref,
                              mid_ref):
    # x_ref  : (H+2, W*Cin)      H-padded input, W folded into the lane dim
    # m1_ref : (3, W*Cin, W*C1)  banded conv1 weights (one slab per kh)
    # b1_ref : (1, W*C1)
    # m2_ref : (3, W*C1, W*C2)   banded conv2 weights
    # b2_ref : (1, W*C2)
    # o_ref  : (H, W*C2)         lane-dense output slab (last dim = 128)
    # mid_ref: (H+2, W*C1)       VMEM scratch: H-padded intermediate
    Hp = x_ref.shape[0]
    H = Hp - 2
    N1 = mid_ref.shape[1]

    # ---- conv1 + bias + ReLU: 3 banded MXU matmuls over the row halo ------
    acc1 = jnp.dot(x_ref[0:H, :], m1_ref[0], preferred_element_type=jnp.float32)
    acc1 = acc1 + jnp.dot(x_ref[1:H + 1, :], m1_ref[1],
                          preferred_element_type=jnp.float32)
    acc1 = acc1 + jnp.dot(x_ref[2:H + 2, :], m1_ref[2],
                          preferred_element_type=jnp.float32)
    mid = jnp.maximum(acc1 + b1_ref[...], 0.0)       # (H, W*C1), stays on-chip

    # ---- stage intermediate into an H-padded VMEM scratch ------------------
    # Two zero halo rows reproduce the H zero-padding for conv2 exactly; no
    # shift matmuls / iota masks needed.
    zero_row = jnp.zeros((1, N1), jnp.float32)
    mid_ref[0:1, :] = zero_row
    mid_ref[H + 1:H + 2, :] = zero_row
    mid_ref[1:H + 1, :] = mid

    # ---- conv2 + bias + ReLU: same banded structure over the scratch ------
    acc2 = jnp.dot(mid_ref[0:H, :], m2_ref[0],
                   preferred_element_type=jnp.float32)
    acc2 = acc2 + jnp.dot(mid_ref[1:H + 1, :], m2_ref[1],
                          preferred_element_type=jnp.float32)
    acc2 = acc2 + jnp.dot(mid_ref[2:H + 2, :], m2_ref[2],
                          preferred_element_type=jnp.float32)
    o_ref[...] = jnp.maximum(acc2 + b2_ref[...], 0.0).astype(o_ref.dtype)


def _band_weights(wt, W):
    """Fold the (kw, channel) axes of a 3x3 HWIO kernel into banded matrices.

    wt: (3, 3, Ci, Co) -> M: (3, W*Ci, W*Co) with
        M[kh, w'*Ci + ci, w*Co + co] = wt[kh, kw, ci, co]  iff  w' == w + kw - 1
    Out-of-range w' are simply absent, which reproduces zero padding along W.
    """
    KH, KW, Ci, Co = wt.shape
    wp = jnp.arange(W)[:, None, None]
    w_ = jnp.arange(W)[None, :, None]
    dw = jnp.arange(KW)[None, None, :]
    sel = (wp == w_ + dw - (KW // 2)).astype(wt.dtype)        # (W, W, KW)
    m = jnp.einsum('pwd,hdio->hpiwo', sel, wt)                # (KH, W, Ci, W, Co)
    return m.reshape(KH, W * Ci, W * Co)


def sliced_model_forward(x_nchw, params):
    """conv3x3 -> ReLU -> conv3x3 -> ReLU, fused into one Pallas TPU kernel.

    x_nchw: (B, Cin, H, W) in PyTorch layout; returns (B, C2, H, W).
    """
    w1, b1, w2, b2 = params
    B, Cin, H, W = x_nchw.shape
    C1, C2 = w1.shape[3], w2.shape[3]

    # Layout plumbing (tiny, one-time): NCHW -> (B, H+2, W*Cin); W is folded
    # into the lane dim, and a 1-row halo is added in H for conv1.
    x = jnp.transpose(x_nchw, (0, 2, 3, 1)).reshape(B, H, W * Cin)
    xf = jnp.pad(x, ((0, 0), (1, 1), (0, 0)))

    m1 = _band_weights(w1, W)                    # (3, W*Cin, W*C1)
    m2 = _band_weights(w2, W)                    # (3, W*C1,  W*C2)
    b1f = jnp.tile(b1, W).reshape(1, W * C1)
    b2f = jnp.tile(b2, W).reshape(1, W * C2)

    yf = pl.pallas_call(
        _fused_conv2x_relu_kernel,
        out_shape=jax.ShapeDtypeStruct((B, H, W * C2), x_nchw.dtype),
        grid_spec=pltpu.PrefetchScalarGridSpec(
            num_scalar_prefetch=0,
            grid=(B,),
            in_specs=[
                pl.BlockSpec((None, H + 2, W * Cin), lambda b: (b, 0, 0)),
                pl.BlockSpec((3, W * Cin, W * C1), lambda b: (0, 0, 0)),
                pl.BlockSpec((1, W * C1), lambda b: (0, 0)),
                pl.BlockSpec((3, W * C1, W * C2), lambda b: (0, 0, 0)),
                pl.BlockSpec((1, W * C2), lambda b: (0, 0)),
            ],
            out_specs=pl.BlockSpec((None, H, W * C2), lambda b: (b, 0, 0)),
            scratch_shapes=[pltpu.VMEM((H + 2, W * C1), jnp.float32)],
        ),
        compiler_params=pltpu.CompilerParams(
            dimension_semantics=("parallel",),
            vmem_limit_bytes=16 * 1024 * 1024,
        ),
    )(xf, m1, b1f, m2, b2f)

    y = yf.reshape(B, H, W, C2)
    return jnp.transpose(y, (0, 3, 1, 2))        # NHWC-fused slab -> NCHW


def make_sliced_params(key, cin=4, c1=8, c2=8):
    """Deterministic synthetic params for the sliced backbone (conv1, conv2)."""
    k1, k2, k3, k4 = jax.random.split(key, 4)
    w1 = jax.random.normal(k1, (3, 3, cin, c1), jnp.float32) * 0.1
    b1 = jax.random.normal(k2, (c1,), jnp.float32) * 0.1
    w2 = jax.random.normal(k3, (3, 3, c1, c2), jnp.float32) * 0.1
    b2 = jax.random.normal(k4, (c2,), jnp.float32) * 0.1
    return (w1, b1, w2, b2)


def _reference_forward(x_nchw, params):
    """Pure-JAX reference (lax.conv) for numerical validation."""
    w1, b1, w2, b2 = params
    dn = ('NHWC', 'HWIO', 'NHWC')
    x = jnp.transpose(x_nchw, (0, 2, 3, 1))
    y = jax.lax.conv_general_dilated(x, w1, (1, 1), 'SAME', dimension_numbers=dn) + b1
    y = jnp.maximum(y, 0.0)
    y = jax.lax.conv_general_dilated(y, w2, (1, 1), 'SAME', dimension_numbers=dn) + b2
    y = jnp.maximum(y, 0.0)
    return jnp.transpose(y, (0, 3, 1, 2))


if __name__ == "__main__":
    key = jax.random.PRNGKey(0)
    k_x, k_p = jax.random.split(key)

    B, Cin, H, W = 2, 4, 16, 16
    x = jax.random.normal(k_x, (B, Cin, H, W), jnp.float32)
    params = make_sliced_params(k_p, cin=Cin, c1=8, c2=8)

    y = jax.jit(sliced_model_forward)(x, params)
    y = jax.block_until_ready(y)

    assert y.shape == (B, 8, H, W), y.shape
    assert y.dtype == jnp.float32

    y_ref = _reference_forward(x, params)
    err = float(jnp.max(jnp.abs(y - y_ref)))
    assert jnp.allclose(y, y_ref, atol=5e-2, rtol=5e-2), err

    print("KERNEL_OK")
</pallas_src>

<mosaic_0001>
module attributes {stable_mosaic.version = 11 : i64} {
  func.func @_fused_conv2x_relu_kernel(%arg0: i32, %arg1: memref<1x18x64xf32, #tpu.memory_space<vmem>>, %arg2: memref<3x64x128xf32, #tpu.memory_space<vmem>>, %arg3: memref<1x128xf32, #tpu.memory_space<vmem>>, %arg4: memref<3x128x128xf32, #tpu.memory_space<vmem>>, %arg5: memref<1x128xf32, #tpu.memory_space<vmem>>, %arg6: memref<1x16x128xf32, #tpu.memory_space<vmem>>, %arg7: memref<18x128xf32, #tpu.memory_space<vmem>>) attributes {dimension_semantics = [#tpu.dimension_semantics<parallel>], iteration_bounds = array<i64: 2>, scalar_prefetch = 0 : i64, scratch_operands = 1 : i64, tpu.core_type = #tpu.core_type<tc>, window_params = [{transform_indices = @transform_0, window_bounds = array<i64: 1, 18, 64>}, {pipeline_mode = #tpu.pipeline_mode<synchronous>, transform_indices = @transform_1, window_bounds = array<i64: 3, 64, 128>}, {pipeline_mode = #tpu.pipeline_mode<synchronous>, transform_indices = @transform_2, window_bounds = array<i64: 1, 128>}, {pipeline_mode = #tpu.pipeline_mode<synchronous>, transform_indices = @transform_3, window_bounds = array<i64: 3, 128, 128>}, {pipeline_mode = #tpu.pipeline_mode<synchronous>, transform_indices = @transform_4, window_bounds = array<i64: 1, 128>}, {transform_indices = @transform_5, window_bounds = array<i64: 1, 16, 128>}]} {
    %c0 = arith.constant 0 : index
    %c0_0 = arith.constant 0 : index
    %c0_1 = arith.constant 0 : index
    %0 = vector.load %arg1[%c0, %c0_0, %c0_1] : memref<1x18x64xf32, #tpu.memory_space<vmem>>, vector<1x16x64xf32>
    %1 = vector.shape_cast %0 : vector<1x16x64xf32> to vector<16x64xf32>
    %c0_2 = arith.constant 0 : index
    %c0_3 = arith.constant 0 : index
    %c0_4 = arith.constant 0 : index
    %2 = vector.load %arg2[%c0_2, %c0_3, %c0_4] : memref<3x64x128xf32, #tpu.memory_space<vmem>>, vector<1x64x128xf32>
    %3 = vector.shape_cast %2 : vector<1x64x128xf32> to vector<64x128xf32>
    %cst = arith.constant dense<0.000000e+00> : vector<16x128xf32>
    %4 = tpu.matmul %1, %3, %cst {dimension_numbers = #tpu.dot_dimension_numbers<[1], [0], [0], [1], [0, 0, 1, 1], [], []>} : vector<16x64xf32>, vector<64x128xf32>, vector<16x128xf32> -> vector<16x128xf32>
    %c0_5 = arith.constant 0 : index
    %c1 = arith.constant 1 : index
    %c0_6 = arith.constant 0 : index
    %5 = vector.load %arg1[%c0_5, %c1, %c0_6] : memref<1x18x64xf32, #tpu.memory_space<vmem>>, vector<1x16x64xf32>
    %6 = vector.shape_cast %5 : vector<1x16x64xf32> to vector<16x64xf32>
    %c1_7 = arith.constant 1 : index
    %c0_8 = arith.constant 0 : index
    %c0_9 = arith.constant 0 : index
    %7 = vector.load %arg2[%c1_7, %c0_8, %c0_9] : memref<3x64x128xf32, #tpu.memory_space<vmem>>, vector<1x64x128xf32>
    %8 = vector.shape_cast %7 : vector<1x64x128xf32> to vector<64x128xf32>
    %cst_10 = arith.constant dense<0.000000e+00> : vector<16x128xf32>
    %9 = tpu.matmul %6, %8, %cst_10 {dimension_numbers = #tpu.dot_dimension_numbers<[1], [0], [0], [1], [0, 0, 1, 1], [], []>} : vector<16x64xf32>, vector<64x128xf32>, vector<16x128xf32> -> vector<16x128xf32>
    %10 = arith.addf %4, %9 : vector<16x128xf32>
    %c0_11 = arith.constant 0 : index
    %c2 = arith.constant 2 : index
    %c0_12 = arith.constant 0 : index
    %11 = vector.load %arg1[%c0_11, %c2, %c0_12] : memref<1x18x64xf32, #tpu.memory_space<vmem>>, vector<1x16x64xf32>
    %12 = vector.shape_cast %11 : vector<1x16x64xf32> to vector<16x64xf32>
    %c2_13 = arith.constant 2 : index
    %c0_14 = arith.constant 0 : index
    %c0_15 = arith.constant 0 : index
    %13 = vector.load %arg2[%c2_13, %c0_14, %c0_15] : memref<3x64x128xf32, #tpu.memory_space<vmem>>, vector<1x64x128xf32>
    %14 = vector.shape_cast %13 : vector<1x64x128xf32> to vector<64x128xf32>
    %cst_16 = arith.constant dense<0.000000e+00> : vector<16x128xf32>
    %15 = tpu.matmul %12, %14, %cst_16 {dimension_numbers = #tpu.dot_dimension_numbers<[1], [0], [0], [1], [0, 0, 1, 1], [], []>} : vector<16x64xf32>, vector<64x128xf32>, vector<16x128xf32> -> vector<16x128xf32>
    %16 = arith.addf %10, %15 : vector<16x128xf32>
    %c0_17 = arith.constant 0 : index
    %c0_18 = arith.constant 0 : index
    %17 = vector.load %arg3[%c0_17, %c0_18] : memref<1x128xf32, #tpu.memory_space<vmem>>, vector<1x128xf32>
    %18 = vector.broadcast %17 : vector<1x128xf32> to vector<16x128xf32>
    %19 = arith.addf %16, %18 : vector<16x128xf32>
    %cst_19 = arith.constant 0.000000e+00 : f32
    %20 = vector.broadcast %cst_19 : f32 to vector<16x128xf32>
    %21 = arith.maximumf %19, %20 : vector<16x128xf32>
    %cst_20 = arith.constant 0.000000e+00 : f32
    %22 = vector.broadcast %cst_20 : f32 to vector<1x128xf32>
    %c0_21 = arith.constant 0 : index
    %c0_22 = arith.constant 0 : index
    %23 = vector.load %arg7[%c0_21, %c0_22] : memref<18x128xf32, #tpu.memory_space<vmem>>, vector<1x128xf32>
    tpu.vector_store %arg7[%c0_21, %c0_22], %22 {strides = array<i32>} : memref<18x128xf32, #tpu.memory_space<vmem>>, vector<1x128xf32>,
    %c17 = arith.constant 17 : index
    %c0_23 = arith.constant 0 : index
    %24 = vector.load %arg7[%c17, %c0_23] : memref<18x128xf32, #tpu.memory_space<vmem>>, vector<1x128xf32>
    tpu.vector_store %arg7[%c17, %c0_23], %22 {strides = array<i32>} : memref<18x128xf32, #tpu.memory_space<vmem>>, vector<1x128xf32>,
    %c1_24 = arith.constant 1 : index
    %c0_25 = arith.constant 0 : index
    %25 = vector.load %arg7[%c1_24, %c0_25] : memref<18x128xf32, #tpu.memory_space<vmem>>, vector<16x128xf32>
    tpu.vector_store %arg7[%c1_24, %c0_25], %21 {strides = array<i32>} : memref<18x128xf32, #tpu.memory_space<vmem>>, vector<16x128xf32>,
    %c0_26 = arith.constant 0 : index
    %c0_27 = arith.constant 0 : index
    %26 = vector.load %arg7[%c0_26, %c0_27] : memref<18x128xf32, #tpu.memory_space<vmem>>, vector<16x128xf32>
    %c0_28 = arith.constant 0 : index
    %c0_29 = arith.constant 0 : index
    %c0_30 = arith.constant 0 : index
    %27 = vector.load %arg4[%c0_28, %c0_29, %c0_30] : memref<3x128x128xf32, #tpu.memory_space<vmem>>, vector<1x128x128xf32>
    %28 = vector.shape_cast %27 : vector<1x128x128xf32> to vector<128x128xf32>
    %cst_31 = arith.constant dense<0.000000e+00> : vector<16x128xf32>
    %29 = tpu.matmul %26, %28, %cst_31 {dimension_numbers = #tpu.dot_dimension_numbers<[1], [0], [0], [1], [0, 0, 1, 1], [], []>} : vector<16x128xf32>, vector<128x128xf32>, vector<16x128xf32> -> vector<16x128xf32>
    %c1_32 = arith.constant 1 : index
    %c0_33 = arith.constant 0 : index
    %30 = vector.load %arg7[%c1_32, %c0_33] : memref<18x128xf32, #tpu.memory_space<vmem>>, vector<16x128xf32>
    %c1_34 = arith.constant 1 : index
    %c0_35 = arith.constant 0 : index
    %c0_36 = arith.constant 0 : index
    %31 = vector.load %arg4[%c1_34, %c0_35, %c0_36] : memref<3x128x128xf32, #tpu.memory_space<vmem>>, vector<1x128x128xf32>
    %32 = vector.shape_cast %31 : vector<1x128x128xf32> to vector<128x128xf32>
    %cst_37 = arith.constant dense<0.000000e+00> : vector<16x128xf32>
    %33 = tpu.matmul %30, %32, %cst_37 {dimension_numbers = #tpu.dot_dimension_numbers<[1], [0], [0], [1], [0, 0, 1, 1], [], []>} : vector<16x128xf32>, vector<128x128xf32>, vector<16x128xf32> -> vector<16x128xf32>
    %34 = arith.addf %29, %33 : vector<16x128xf32>
    %c2_38 = arith.constant 2 : index
    %c0_39 = arith.constant 0 : index
    %35 = vector.load %arg7[%c2_38, %c0_39] : memref<18x128xf32, #tpu.memory_space<vmem>>, vector<16x128xf32>
    %c2_40 = arith.constant 2 : index
    %c0_41 = arith.constant 0 : index
    %c0_42 = arith.constant 0 : index
    %36 = vector.load %arg4[%c2_40, %c0_41, %c0_42] : memref<3x128x128xf32, #tpu.memory_space<vmem>>, vector<1x128x128xf32>
    %37 = vector.shape_cast %36 : vector<1x128x128xf32> to vector<128x128xf32>
    %cst_43 = arith.constant dense<0.000000e+00> : vector<16x128xf32>
    %38 = tpu.matmul %35, %37, %cst_43 {dimension_numbers = #tpu.dot_dimension_numbers<[1], [0], [0], [1], [0, 0, 1, 1], [], []>} : vector<16x128xf32>, vector<128x128xf32>, vector<16x128xf32> -> vector<16x128xf32>
    %39 = arith.addf %34, %38 : vector<16x128xf32>
    %c0_44 = arith.constant 0 : index
    %c0_45 = arith.constant 0 : index
    %40 = vector.load %arg5[%c0_44, %c0_45] : memref<1x128xf32, #tpu.memory_space<vmem>>, vector<1x128xf32>
    %41 = vector.broadcast %40 : vector<1x128xf32> to vector<16x128xf32>
    %42 = arith.addf %39, %41 : vector<16x128xf32>
    %cst_46 = arith.constant 0.000000e+00 : f32
    %43 = vector.broadcast %cst_46 : f32 to vector<16x128xf32>
    %44 = arith.maximumf %42, %43 : vector<16x128xf32>
    %c0_47 = arith.constant 0 : index
    %c0_48 = arith.constant 0 : index
    %c0_49 = arith.constant 0 : index
    %45 = vector.load %arg6[%c0_47, %c0_48, %c0_49] : memref<1x16x128xf32, #tpu.memory_space<vmem>>, vector<1x16x128xf32>
    %46 = vector.shape_cast %45 : vector<1x16x128xf32> to vector<16x128xf32>
    %47 = vector.shape_cast %44 : vector<16x128xf32> to vector<1x16x128xf32>
    tpu.vector_store %arg6[%c0_47, %c0_48, %c0_49], %47 {strides = array<i32>} : memref<1x16x128xf32, #tpu.memory_space<vmem>>, vector<1x16x128xf32>,
    return
  }
  func.func @transform_0(%arg0: i32) -> (i32, i32, i32) {
    %c0_i32 = arith.constant 0 : i32
    %c0_i32_0 = arith.constant 0 : i32
    %c0_i32_1 = arith.constant 0 : i32
    return %arg0, %c0_i32, %c0_i32_0 : i32, i32, i32
  }
  func.func @transform_1(%arg0: i32) -> (i32, i32, i32) {
    %c0_i32 = arith.constant 0 : i32
    %c0_i32_0 = arith.constant 0 : i32
    %c0_i32_1 = arith.constant 0 : i32
    %c0_i32_2 = arith.constant 0 : i32
    return %c0_i32, %c0_i32_0, %c0_i32_1 : i32, i32, i32
  }
  func.func @transform_2(%arg0: i32) -> (i32, i32) {
    %c0_i32 = arith.constant 0 : i32
    %c0_i32_0 = arith.constant 0 : i32
    %c0_i32_1 = arith.constant 0 : i32
    return %c0_i32, %c0_i32_0 : i32, i32
  }
  func.func @transform_3(%arg0: i32) -> (i32, i32, i32) {
    %c0_i32 = arith.constant 0 : i32
    %c0_i32_0 = arith.constant 0 : i32
    %c0_i32_1 = arith.constant 0 : i32
    %c0_i32_2 = arith.constant 0 : i32
    return %c0_i32, %c0_i32_0, %c0_i32_1 : i32, i32, i32
  }
  func.func @transform_4(%arg0: i32) -> (i32, i32) {
    %c0_i32 = arith.constant 0 : i32
    %c0_i32_0 = arith.constant 0 : i32
    %c0_i32_1 = arith.constant 0 : i32
    return %c0_i32, %c0_i32_0 : i32, i32
  }
  func.func @transform_5(%arg0: i32) -> (i32, i32, i32) {
    %c0_i32 = arith.constant 0 : i32
    %c0_i32_0 = arith.constant 0 : i32
    %c0_i32_1 = arith.constant 0 : i32
    return %arg0, %c0_i32, %c0_i32_0 : i32, i32, i32
  }
}

</mosaic_0001>

<bundles_post_ra>
// kernel: tile.13
= control target key start
LH: loop header
LB: loop body
LE: loop exit
PB: predicated region body
PF: predicated region fallthrough
CT: control target
= control target key end

     0   :  { %s28_s0 = inlined_call_operand.vmem [shape: f32[8], index: 0, kind: input, shape index: {}]   ;;  %s29_s1 = inlined_call_operand.vmem [shape: f32[16,8], index: 1, kind: output, shape index: {}]  }
   0x1   :  { %v4_v0 = vld [vmem:[%s28_s0] ss:$0 sm:$0xff] }
   0x2   :  { %5 = vst [vmem:[%s29_s1] sm:$0xff] %v4_v0  ;;  %8 = vst [vmem:[%s29_s1 + $0x8] sm:$0xff] %v4_v0 }

// kernel: tile.14
= control target key start
LH: loop header
LB: loop body
LE: loop exit
PB: predicated region body
PF: predicated region fallthrough
CT: control target
= control target key end

     0   :  { %s133_s10 = smov 120   ;;  %s134_s11 = smov 104   ;;  %vm3_vm0 = vcmask 64512   ;;  %vm9_vm1 = vcmask 1048512   ;;  %vm15_vm2 = vcmask 982912   ;;  %vm21_vm3 = vcmask 917312   ;;  %s209_s0 = inlined_call_operand.vmem [shape: f32[16,8], index: 0, kind: input, shape index: {}]   ;;  %s210_s1 = inlined_call_operand.vmem [shape: f32[1,128], index: 1, kind: output, shape index: {}]  }
   0x1   :  { %v103_v0 = vld [vmem:[%s209_s0 + $0xf] sm:$0x1]   ;;  %v105_v1 = vld [vmem:[%s209_s0 + $0xd] sm:$0x1]   ;;  %v104_v2 = vld [vmem:[%s209_s0 + $0xe] sm:$0x1]  }
   0x2   :  { %7 = vrot.lane.b32.xlu0 %v103_v0, %s133_s10  ;;  %19 = vrot.lane.b32.xlu1 %v105_v1, %s134_s11  ;;  %v106_v3 = vld [vmem:[%s209_s0 + $0xc] sm:$0x1]   ;;  %s135_s16 = smov 112   ;;  %s136_s17 = smov 96   ;;  %v107_v4 = vld [vmem:[%s209_s0 + $0xb] sm:$0x1]  }
   0x3   :  { %v108_v5 = vld [vmem:[%s209_s0 + $0xa] sm:$0x1]   ;;  %v2_v6 = vld [vmem:[%s209_s0] sm:$0x1]   ;;  %s137_s24 = smov 88   ;;  %s138_s25 = smov 80  }
   0x4   :  { %4 = vst.msk [vmem:[#allocation0] sm:$0x1] %vm3_vm0, %v2_v6   ;;  %v109_v7 = vld [vmem:[%s209_s0 + $0x9] sm:$0x1]   ;;  %v110_v8 = vld [vmem:[%s209_s0 + $0x8] sm:$0x1]  }
   0x5   :  { %s139_s30 = smov 72   ;;  %s140_s2 = smov 64   ;;  %v111_v9 = vld [vmem:[%s209_s0 + $0x7] sm:$0x1]   ;;  %v112_v10 = vld [vmem:[%s209_s0 + $0x6] sm:$0x1]  }
   0x6   :  { %13 = vrot.lane.b32.xlu0 %v104_v2, %s135_s16  ;;  %25 = vrot.lane.b32.xlu1 %v106_v3, %s136_s17  ;;  %s141_s7 = smov 56   ;;  %s142_s8 = smov 48   ;;  %v113_v11 = vld [vmem:[%s209_s0 + $0x5] sm:$0x1]   ;;  %v114_v12 = vld [vmem:[%s209_s0 + $0x4] sm:$0x1]  }
   0x7   :  { %s143_s13 = smov 40   ;;  %s144_s14 = smov 32   ;;  %v115_v13 = vld [vmem:[%s209_s0 + $0x3] sm:$0x1]   ;;  %v116_v14 = vld [vmem:[%s209_s0 + $0x2] sm:$0x1]  }
   0x8   :  { %s145_s19 = smov 24   ;;  %s146_s20 = smov 16   ;;  %v117_v15 = vld [vmem:[%s209_s0 + $0x1] sm:$0x1]   ;;  %vm27_vm4 = vcmask 851712   ;;  %vm33_vm5 = vcmask 786112  }
   0x9   :  { %s147_s0 = smov 8   ;;  %vm39_vm6 = vcmask 720512   ;;  %vm45_vm7 = vcmask 654912   ;;  %vm51_vm8 = vcmask 589312   ;;  %vm57_vm9 = vcmask 523712  }
   0xa   :  { %31 = vrot.lane.b32.xlu0 %v107_v4, %s137_s24  ;;  %37 = vrot.lane.b32.xlu1 %v108_v5, %s138_s25  ;;  %vm63_vm10 = vcmask 458112   ;;  %vm69_vm11 = vcmask 392512   ;;  %vm75_vm12 = vcmask 326912   ;;  %vm81_vm13 = vcmask 261312  }
   0xb   :  { %vm87_vm14 = vcmask 195712   ;;  %vm93_vm15 = vcmask 130112  }
   0xe   :  { %43 = vrot.lane.b32.xlu0 %v109_v7, %s139_s30  ;;  %49 = vrot.lane.b32.xlu1 %v110_v8, %s140_s2 }
  0x12   :  { %55 = vrot.lane.b32.xlu0 %v111_v9, %s141_s7  ;;  %61 = vrot.lane.b32.xlu1 %v112_v10, %s142_s8 }
  0x16   :  { %67 = vrot.lane.b32.xlu0 %v113_v11, %s143_s13  ;;  %73 = vrot.lane.b32.xlu1 %v114_v12, %s144_s14 }
  0x1a   :  { %79 = vrot.lane.b32.xlu0 %v115_v13, %s145_s19  ;;  %85 = vrot.lane.b32.xlu1 %v116_v14, %s146_s20 }
  0x1e   :  { %91 = vrot.lane.b32.xlu0 %v117_v15, %s147_s0 }
  0x74   :  { %v8_v16 = vpop.permute.xlu0 %7   ;;  %v20_v17 = vpop.permute.xlu1 %19  }
  0x75   :  { %10 = vst.msk [vmem:[#allocation0] sm:$0x1] %vm9_vm1, %v8_v16  }
  0x78   :  { %v14_v18 = vpop.permute.xlu0 %13   ;;  %v26_v19 = vpop.permute.xlu1 %25  }
  0x79   :  { %16 = vst.msk [vmem:[#allocation0] sm:$0x1] %vm15_vm2, %v14_v18  }
  0x7a   :  { %22 = vst.msk [vmem:[#allocation0] sm:$0x1] %vm21_vm3, %v20_v17  }
  0x7b   :  { %28 = vst.msk [vmem:[#allocation0] sm:$0x1] %vm27_vm4, %v26_v19  }
  0x7c   :  { %v32_v20 = vpop.permute.xlu0 %31   ;;  %v38_v21 = vpop.permute.xlu1 %37  }
  0x7d   :  { %34 = vst.msk [vmem:[#allocation0] sm:$0x1] %vm33_vm5, %v32_v20  }
  0x7e   :  { %40 = vst.msk [vmem:[#allocation0] sm:$0x1] %vm39_vm6, %v38_v21  }
  0x80   :  { %v44_v22 = vpop.permute.xlu0 %43   ;;  %v50_v23 = vpop.permute.xlu1 %49  }
  0x81   :  { %46 = vst.msk [vmem:[#allocation0] sm:$0x1] %vm45_vm7, %v44_v22  }
  0x82   :  { %52 = vst.msk [vmem:[#allocation0] sm:$0x1] %vm51_vm8, %v50_v23  }
  0x84   :  { %v56_v24 = vpop.permute.xlu0 %55   ;;  %v62_v25 = vpop.permute.xlu1 %61  }
  0x85   :  { %58 = vst.msk [vmem:[#allocation0] sm:$0x1] %vm57_vm9, %v56_v24  }
  0x86   :  { %64 = vst.msk [vmem:[#allocation0] sm:$0x1] %vm63_vm10, %v62_v25  }
  0x88   :  { %v68_v26 = vpop.permute.xlu0 %67   ;;  %v74_v27 = vpop.permute.xlu1 %73  }
  0x89   :  { %70 = vst.msk [vmem:[#allocation0] sm:$0x1] %vm69_vm11, %v68_v26  }
  0x8a   :  { %76 = vst.msk [vmem:[#allocation0] sm:$0x1] %vm75_vm12, %v74_v27  }
  0x8c   :  { %v80_v28 = vpop.permute.xlu0 %79   ;;  %v86_v29 = vpop.permute.xlu1 %85  }
  0x8d   :  { %82 = vst.msk [vmem:[#allocation0] sm:$0x1] %vm81_vm13, %v80_v28  }
  0x8e   :  { %88 = vst.msk [vmem:[#allocation0] sm:$0x1] %vm87_vm14, %v86_v29  }
  0x90   :  { %v92_v30 = vpop.permute.xlu0 %91  }
  0x91   :  { %94 = vst.msk [vmem:[#allocation0] sm:$0x1] %vm93_vm15, %v92_v30  }
  0x98   :  { %v99_v31 = vld [vmem:[#allocation0] sm:$0x1] }
  0x99   :  { %102 = vst [vmem:[%s210_s1] sm:$0x1] %v99_v31 }

// kernel: sliced_model_forward.1
= control target key start
LH: loop header
LB: loop body
LE: loop exit
PB: predicated region body
PF: predicated region fallthrough
CT: control target
= control target key end

     0   :  { %s1231_s18 = smov 0   ;;  %s1488_s0 = inlined_call_operand.vmem [shape: f32[2,18,64], index: 0, kind: input, shape index: {}]   ;;  %s1489_s1 = inlined_call_operand.vmem [shape: f32[3,64,128], index: 1, kind: input, shape index: {}]   ;;  %s1490_s2 = inlined_call_operand.vmem [shape: f32[1,128], index: 2, kind: input, shape index: {}]   ;;  %s1491_s3 = inlined_call_operand.vmem [shape: f32[3,128,128], index: 3, kind: input, shape index: {}]   ;;  %s1492_s4 = inlined_call_operand.vmem [shape: f32[1,128], index: 4, kind: input, shape index: {}]   ;;  %s1493_s5 = inlined_call_operand.vmem [shape: f32[2,16,128], index: 5, kind: output, shape index: {}]  }
   0x1 LB: > { %s869_s19 = sadd.s32 4294967295, %s1198_s18   ;;  %p873_p0 = scmp.ge.s32.totalorder %s1198_s18, 1  ;;  %s1198_s18 = sphi %s1231_s18, %s15_s18  }
   0x2   : > { %p187_p1 = scmp.lt.s32.totalorder %s1198_s18, 3 }
   0x4   : > { %p188_p2 = pnand %p873_p0, %p187_p1 }
   0x5   : > { %p215_p3 = scmp.lt.s32.totalorder (!%p188_p2), %s869_s19, 1 }
   0x6   : > { %191 = sbr.rel (%p188_p2) target bundleno = 483 (0x1e3), region = 40 }
   0xb   : > { %v884_v0 = vld [vmem:[%s1489_s1 + $0x78] sm:$0xff]  ;;  %v883_v2 = vld [vmem:[%s1489_s1 + $0x70] sm:$0xff]  ;;  %v882_v4 = vld [vmem:[%s1489_s1 + $0x68] sm:$0xff]  ;;  %s1495_s19 = smov (!%p215_p3, %s869_s19), 1  ;;  %vm246_vm0 = vcmask 523264   ;;  %v1200_v58 = vmov 0.0  }
   0xc   : > { %v234_v1 = vld [vmem:[%s1489_s1 + $0x38] sm:$0xff]  ;;  %1020 = vmatprep.subr.mxu0 %v884_v0  ;;  %v233_v3 = vld [vmem:[%s1489_s1 + $0x30] sm:$0xff]  ;;  %v232_v5 = vld [vmem:[%s1489_s1 + $0x28] sm:$0xff]  ;;  %s1182_s15 = smul.u32 24, %s1495_s19  ;;  %514 = vst [vmem:[#allocation2] sm:$0x1] %v1200_v58 }
   0xd   : > { %1039 = vmatprep.subr.mxu1 %v234_v1  ;;  %1021 = vmatpush3.msra.mxu0 %v884_v0  ;;  %v881_v6 = vld [vmem:[%s1489_s1 + $0x60] sm:$0xff]  ;;  %v880_v8 = vld [vmem:[%s1489_s1 + $0x58] sm:$0xff]  ;;  %v879_v10 = vld [vmem:[%s1489_s1 + $0x50] sm:$0xff]  ;;  %515 = vst [vmem:[#allocation2 + $0x11] sm:$0x1] %v1200_v58  ;;  %s935_s9 = sshll.u32 %s1495_s19, 4 }
   0xe   : > { %1040 = vmatpush3.msra.mxu1 %v234_v1  ;;  %1022 = vmatprep.subr.mxu0 %v883_v2  ;;  %v231_v7 = vld [vmem:[%s1489_s1 + $0x20] sm:$0xff]  ;;  %v230_v9 = vld [vmem:[%s1489_s1 + $0x18] sm:$0xff]  ;;  %v229_v11 = vld [vmem:[%s1489_s1 + $0x10] sm:$0xff]  ;;  %s1287_s28 = scalar_lea.vmem %s1488_s0, %s1182_s15  ;;  %s224_s12 = scalar_lea.vmem %s1493_s5, %s935_s9 }
   0xf   : > { %1041 = vmatprep.subr.mxu1 %v233_v3  ;;  %1023 = vmatpush3.msra.mxu0 %v883_v2  ;;  %v878_v12 = vld [vmem:[%s1489_s1 + $0x48] sm:$0xff]  ;;  %v877_v14 = vld [vmem:[%s1489_s1 + $0x40] sm:$0xff]  ;;  %v896_v20 = vld [vmem:[%s1489_s1 + $0xb8] sm:$0xff] }
  0x10   : > { %1042 = vmatpush3.msra.mxu1 %v233_v3  ;;  %1024 = vmatprep.subr.mxu0 %v882_v4  ;;  %v228_v13 = vld [vmem:[%s1489_s1 + $0x8] sm:$0xff]  ;;  %v227_v15 = vld [vmem:[%s1489_s1] sm:$0xff]  ;;  %v895_v22 = vld [vmem:[%s1489_s1 + $0xb0] sm:$0xff] }
  0x11   : > { %1043 = vmatprep.subr.mxu1 %v232_v5  ;;  %1025 = vmatpush3.msra.mxu0 %v882_v4  ;;  %v235_v16 = vld [vmem:[%s1287_s28 + $0x1] sm:$0xff]  ;;  %v236_v18 = vld [vmem:[%s1287_s28 + $0x9] sm:$0xff]  ;;  %v892_v25 = vld [vmem:[%s1489_s1 + $0x98] sm:$0xff] }
  0x12   : > { %1044 = vmatpush3.msra.mxu1 %v232_v5  ;;  %1026 = vmatprep.subr.mxu0 %v881_v6  ;;  %v225_v17 = vld [vmem:[%s1287_s28] sm:$0xff]  ;;  %v226_v19 = vld [vmem:[%s1287_s28 + $0x8] sm:$0xff]  ;;  %v891_v26 = vld [vmem:[%s1489_s1 + $0x90] sm:$0xff] }
  0x13   : > { %1045 = vmatprep.subr.mxu1 %v231_v7  ;;  %1027 = vmatpush3.msra.mxu0 %v881_v6  ;;  %v409_v21 = vld [vmem:[%s1287_s28 + $0x2] sm:$0xff]  ;;  %v410_v29 = vld [vmem:[%s1287_s28 + $0xa] sm:$0xff]  ;;  %v915_v30 = vld [vmem:[%s1491_s3 + $0xf8] sm:$0xff] }
  0x14   : > { %1046 = vmatpush3.msra.mxu1 %v231_v7  ;;  %1028 = vmatprep.subr.mxu0 %v880_v8  ;;  %v894_v23 = vld [vmem:[%s1489_s1 + $0xa8] sm:$0xff]  ;;  %v893_v24 = vld [vmem:[%s1489_s1 + $0xa0] sm:$0xff]  ;;  %v914_v31 = vld [vmem:[%s1491_s3 + $0xf0] sm:$0xff] }
  0x15   : > { %1047 = vmatprep.subr.mxu1 %v230_v9  ;;  %1029 = vmatpush3.msra.mxu0 %v880_v8  ;;  %v890_v27 = vld [vmem:[%s1489_s1 + $0x88] sm:$0xff]  ;;  %v889_v28 = vld [vmem:[%s1489_s1 + $0x80] sm:$0xff]  ;;  %v911_v34 = vld [vmem:[%s1491_s3 + $0xd8] sm:$0xff] }
  0x16   : > { %1048 = vmatpush3.msra.mxu1 %v230_v9  ;;  %1030 = vmatprep.subr.mxu0 %v879_v10  ;;  %v913_v32 = vld [vmem:[%s1491_s3 + $0xe8] sm:$0xff]  ;;  %v912_v33 = vld [vmem:[%s1491_s3 + $0xe0] sm:$0xff]  ;;  %v535_v35 = vld [vmem:[%s1491_s3 + $0x78] sm:$0xff] }
  0x17   : > { %1049 = vmatprep.subr.mxu1 %v229_v11  ;;  %1031 = vmatpush3.msra.mxu0 %v879_v10  ;;  %v534_v36 = vld [vmem:[%s1491_s3 + $0x70] sm:$0xff]  ;;  %v533_v37 = vld [vmem:[%s1491_s3 + $0x68] sm:$0xff]  ;;  %v532_v40 = vld [vmem:[%s1491_s3 + $0x60] sm:$0xff] }
  0x18   : > { %1050 = vmatpush3.msra.mxu1 %v229_v11  ;;  %1032 = vmatprep.subr.mxu0 %v878_v12  ;;  %v910_v38 = vld [vmem:[%s1491_s3 + $0xd0] sm:$0xff]  ;;  %v909_v39 = vld [vmem:[%s1491_s3 + $0xc8] sm:$0xff]  ;;  %v908_v41 = vld [vmem:[%s1491_s3 + $0xc0] sm:$0xff] }
  0x19   : > { %1051 = vmatprep.subr.mxu1 %v228_v13  ;;  %1033 = vmatpush3.msra.mxu0 %v878_v12  ;;  %v531_v42 = vld [vmem:[%s1491_s3 + $0x58] sm:$0xff]  ;;  %v530_v44 = vld [vmem:[%s1491_s3 + $0x50] sm:$0xff]  ;;  %v529_v46 = vld [vmem:[%s1491_s3 + $0x48] sm:$0xff] }
  0x1a   : > { %1052 = vmatpush3.msra.mxu1 %v228_v13  ;;  %1034 = vmatprep.subr.mxu0 %v877_v14  ;;  %v907_v43 = vld [vmem:[%s1491_s3 + $0xb8] sm:$0xff]  ;;  %v906_v45 = vld [vmem:[%s1491_s3 + $0xb0] sm:$0xff]  ;;  %v905_v47 = vld [vmem:[%s1491_s3 + $0xa8] sm:$0xff] }
  0x1b   : > { %1053 = vmatprep.subr.mxu1 %v227_v15  ;;  %1035 = vmatpush3.msra.mxu0 %v877_v14  ;;  %v904_v48 = vld [vmem:[%s1491_s3 + $0xa0] sm:$0xff]  ;;  %v903_v50 = vld [vmem:[%s1491_s3 + $0x98] sm:$0xff]  ;;  %v902_v52 = vld [vmem:[%s1491_s3 + $0x90] sm:$0xff] }
  0x1c   : > { %1036 = vmatprep.mubr.msk.f32.mxu0 %vm246_vm0, %v235_v16  ;;  %1054 = vmatpush3.msra.mxu1 %v227_v15  ;;  %v528_v49 = vld [vmem:[%s1491_s3 + $0x40] sm:$0xff]  ;;  %v527_v51 = vld [vmem:[%s1491_s3 + $0x38] sm:$0xff]  ;;  %v526_v53 = vld [vmem:[%s1491_s3 + $0x30] sm:$0xff] }
  0x1d   : > { %1055 = vmatprep.mubr.msk.f32.mxu1 %vm246_vm0, %v225_v17  ;;  %1037 = vmatmul.mubr.msk.f32.vlgmr.msra.gmra.mxu0 %vm246_vm0, %v236_v18  ;;  %v901_v54 = vld [vmem:[%s1491_s3 + $0x88] sm:$0xff]  ;;  %v900_v56 = vld [vmem:[%s1491_s3 + $0x80] sm:$0xff]  ;;  %v931_v59 = vld [vmem:[%s1491_s3 + $0x178] sm:$0xff] }
  0x1e   : > { %1056 = vmatmul.mubr.msk.f32.vlgmr.msra.gmra.mxu1 %vm246_vm0, %v226_v19  ;;  %1058 = vmatprep.subr.mxu0 %v896_v20  ;;  %v525_v55 = vld [vmem:[%s1491_s3 + $0x28] sm:$0xff]  ;;  %v524_v57 = vld [vmem:[%s1491_s3 + $0x20] sm:$0xff]  ;;  %v523_v60 = vld [vmem:[%s1491_s3 + $0x18] sm:$0xff] }
  0x1f   : > { %1074 = vmatprep.mubr.msk.f32.mxu0 %vm246_vm0, %v409_v21  ;;  %1059 = vmatpush3.msra.mxu0 %v896_v20  ;;  %v522_v61 = vld [vmem:[%s1491_s3 + $0x10] sm:$0xff]  ;;  %v521_v62 = vld [vmem:[%s1491_s3 + $0x8] sm:$0xff]  ;;  %v520_v63 = vld [vmem:[%s1491_s3] sm:$0xff] }
  0x20   : > { %1060 = vmatprep.subr.mxu0 %v895_v22  ;;  %1077 = vmatprep.subr.mxu1 %v915_v30  ;;  %v899_v6 = vld [vmem:[%s1490_s2] ss:$0 sm:$0xff]  ;;  %v930_v15 = vld [vmem:[%s1491_s3 + $0x170] sm:$0xff]  ;;  %v929_v16 = vld [vmem:[%s1491_s3 + $0x168] sm:$0xff] }
  0x21   : > { %1061 = vmatpush3.msra.mxu0 %v895_v22  ;;  %1078 = vmatpush3.msra.mxu1 %v915_v30  ;;  %v928_v17 = vld [vmem:[%s1491_s3 + $0x160] sm:$0xff]  ;;  %v927_v18 = vld [vmem:[%s1491_s3 + $0x158] sm:$0xff]  ;;  %v926_v22 = vld [vmem:[%s1491_s3 + $0x150] sm:$0xff] }
  0x22   : > { %1062 = vmatprep.subr.mxu0 %v894_v23  ;;  %1079 = vmatprep.subr.mxu1 %v914_v31  ;;  %v918_v30 = vld [vmem:[%s1491_s3 + $0x110] sm:$0xff] }
  0x23   : > { %1063 = vmatpush3.msra.mxu0 %v894_v23  ;;  %1080 = vmatpush3.msra.mxu1 %v914_v31  ;;  %v925_v23 = vld [vmem:[%s1491_s3 + $0x148] sm:$0xff] }
  0x24   : > { %1064 = vmatprep.subr.mxu0 %v893_v24  ;;  %1081 = vmatprep.subr.mxu1 %v913_v32  ;;  %v917_v31 = vld [vmem:[%s1491_s3 + $0x108] sm:$0xff] }
  0x25   : > { %1065 = vmatpush3.msra.mxu0 %v893_v24  ;;  %1082 = vmatpush3.msra.mxu1 %v913_v32  ;;  %v924_v24 = vld [vmem:[%s1491_s3 + $0x140] sm:$0xff] }
  0x26   : > { %1066 = vmatprep.subr.mxu0 %v892_v25  ;;  %1083 = vmatprep.subr.mxu1 %v912_v33  ;;  %v916_v32 = vld [vmem:[%s1491_s3 + $0x100] sm:$0xff] }
  0x27   : > { %1067 = vmatpush3.msra.mxu0 %v892_v25  ;;  %1084 = vmatpush3.msra.mxu1 %v912_v33  ;;  %v923_v25 = vld [vmem:[%s1491_s3 + $0x138] sm:$0xff] }
  0x28   : > { %1068 = vmatprep.subr.mxu0 %v891_v26  ;;  %1085 = vmatprep.subr.mxu1 %v911_v34 }
  0x29   : > { %1069 = vmatpush3.msra.mxu0 %v891_v26  ;;  %1086 = vmatpush3.msra.mxu1 %v911_v34  ;;  %v922_v26 = vld [vmem:[%s1491_s3 + $0x130] sm:$0xff] }
  0x2a   : > { %1070 = vmatprep.subr.mxu0 %v890_v27  ;;  %1087 = vmatprep.subr.mxu1 %v910_v38 }
  0x2b   : > { %1071 = vmatpush3.msra.mxu0 %v890_v27  ;;  %1088 = vmatpush3.msra.mxu1 %v910_v38  ;;  %v921_v27 = vld [vmem:[%s1491_s3 + $0x128] sm:$0xff] }
  0x2c   : > { %1072 = vmatprep.subr.mxu0 %v889_v28  ;;  %1089 = vmatprep.subr.mxu1 %v909_v39 }
  0x2d   : > { %1073 = vmatpush3.msra.mxu0 %v889_v28  ;;  %1090 = vmatpush3.msra.mxu1 %v909_v39  ;;  %v920_v28 = vld [vmem:[%s1491_s3 + $0x120] sm:$0xff] }
  0x2e   : > { %1075 = vmatmul.mubr.msk.f32.vlgmr.msra.gmra.mxu0 %vm246_vm0, %v410_v29  ;;  %1112 = vmatprep.subr.mxu0 %v535_v35  ;;  %v919_v29 = vld [vmem:[%s1491_s3 + $0x118] sm:$0xff] }
  0x2f   : > { %1113 = vmatpush3.msra.mxu0 %v535_v35  ;;  %1091 = vmatprep.subr.mxu1 %v908_v41 }
  0x30   : > { %1114 = vmatprep.subr.mxu0 %v534_v36  ;;  %1092 = vmatpush3.msra.mxu1 %v908_v41 }
  0x31   : > { %1115 = vmatpush3.msra.mxu0 %v534_v36  ;;  %1093 = vmatprep.subr.mxu1 %v907_v43 }
  0x32   : > { %1116 = vmatprep.subr.mxu0 %v533_v37  ;;  %1094 = vmatpush3.msra.mxu1 %v907_v43 }
  0x33   : > { %1117 = vmatpush3.msra.mxu0 %v533_v37  ;;  %1095 = vmatprep.subr.mxu1 %v906_v45 }
  0x34   : > { %1118 = vmatprep.subr.mxu0 %v532_v40  ;;  %1096 = vmatpush3.msra.mxu1 %v906_v45 }
  0x35   : > { %1119 = vmatpush3.msra.mxu0 %v532_v40  ;;  %1097 = vmatprep.subr.mxu1 %v905_v47  ;;  %v932_v40 = vld [vmem:[%s1492_s4] ss:$0 sm:$0xff] }
  0x36   : > { %1120 = vmatprep.subr.mxu0 %v531_v42  ;;  %1098 = vmatpush3.msra.mxu1 %v905_v47 }
  0x37   : > { %1121 = vmatpush3.msra.mxu0 %v531_v42  ;;  %1099 = vmatprep.subr.mxu1 %v904_v48 }
  0x38   : > { %1122 = vmatprep.subr.mxu0 %v530_v44  ;;  %1100 = vmatpush3.msra.mxu1 %v904_v48 }
  0x39   : > { %1123 = vmatpush3.msra.mxu0 %v530_v44  ;;  %1101 = vmatprep.subr.mxu1 %v903_v50 }
  0x3a   : > { %1124 = vmatprep.subr.mxu0 %v529_v46  ;;  %1102 = vmatpush3.msra.mxu1 %v903_v50 }
  0x3b   : > { %1125 = vmatpush3.msra.mxu0 %v529_v46  ;;  %1103 = vmatprep.subr.mxu1 %v902_v52 }
  0x3c   : > { %1126 = vmatprep.subr.mxu0 %v528_v49  ;;  %1104 = vmatpush3.msra.mxu1 %v902_v52 }
  0x3d   : > { %1127 = vmatpush3.msra.mxu0 %v528_v49  ;;  %1105 = vmatprep.subr.mxu1 %v901_v54 }
  0x3e   : > { %1128 = vmatprep.subr.mxu0 %v527_v51  ;;  %1106 = vmatpush3.msra.mxu1 %v901_v54 }
  0x3f   : > { %1129 = vmatpush3.msra.mxu0 %v527_v51  ;;  %1107 = vmatprep.subr.mxu1 %v900_v56 }
  0x40   : > { %1130 = vmatprep.subr.mxu0 %v526_v53  ;;  %1108 = vmatpush3.msra.mxu1 %v900_v56 }
  0x41   : > { %1131 = vmatpush3.msra.mxu0 %v526_v53  ;;  %1147 = vmatprep.subr.mxu1 %v931_v59 }
  0x42   : > { %1132 = vmatprep.subr.mxu0 %v525_v55 }
  0x43   : > { %1133 = vmatpush3.msra.mxu0 %v525_v55 }
  0x44   : > { %1134 = vmatprep.subr.mxu0 %v524_v57 }
  0x45   : > { %1135 = vmatpush3.msra.mxu0 %v524_v57 }
  0x46   : > { %1136 = vmatprep.subr.mxu0 %v523_v60 }
  0x47   : > { %1137 = vmatpush3.msra.mxu0 %v523_v60 }
  0x48   : > { %1138 = vmatprep.subr.mxu0 %v522_v61 }
  0x49   : > { %1139 = vmatpush3.msra.mxu0 %v522_v61 }
  0x4a   : > { %1140 = vmatprep.subr.mxu0 %v521_v62 }
  0x4b   : > { %1141 = vmatpush3.msra.mxu0 %v521_v62 }
  0x4c   : > { %1142 = vmatprep.subr.mxu0 %v520_v63 }
  0x4d   : > { %1143 = vmatpush3.msra.mxu0 %v520_v63 }
  0xdd   : > { %v1038_v0 = vpop.f32.mrf.mxu0 }
  0xde   : > { %v1057_v1 = vpop.f32.mrf.mxu1 }
  0xdf   : > { %v319_v2 = vpop.f32.mrf.mxu0  ;;  %v406_v4 = vadd.f32 %v1057_v1, %v1038_v0 }
  0xe0   : > { %v400_v3 = vpop.f32.mrf.mxu1 }
  0xe1   : > { %v401_v7 = vadd.f32 %v400_v3, %v319_v2 }
  0xee   : > { %v1076_v5 = vpop.f32.mrf.mxu0 }
  0xef   : > { %v502_v8 = vadd.f32 %v1076_v5, %v406_v4 }
  0xf0   : > { %v492_v9 = vpop.f32.mrf.mxu0 }
  0xf1   : > { %v511_v10 = vadd.f32 %v899_v6, %v502_v8  ;;  %v501_v11 = vadd.f32 %v492_v9, %v401_v7 }
  0xf3   : > { %v513_v12 = vmax.f32 %v511_v10, 0.0  ;;  %v510_v13 = vadd.f32 %v899_v6, %v501_v11 }
  0xf5   : > { %517 = vst [vmem:[#allocation2 + $0x9] sm:$0xff] %v513_v12  ;;  %v512_v14 = vmax.f32 %v510_v13, 0.0 }
  0xf7   : > { %516 = vst [vmem:[#allocation2 + $0x1] sm:$0xff] %v512_v14  ;;  %1109 = vmatprep.mubr.f32.mxu1 %v512_v14 }
  0xf8   : > { %1110 = vmatmul.mubr.f32.vlgmr.msra.gmra.mxu1 %v513_v12 }
  0xf9   : > { %1148 = vmatpush3.msra.mxu1 %v931_v59 }
  0xfa   : > { %1149 = vmatprep.subr.mxu1 %v930_v15 }
  0xfb   : > { %1150 = vmatpush3.msra.mxu1 %v930_v15 }
  0xfc   : > { %1151 = vmatprep.subr.mxu1 %v929_v16  ;;  %v706_v33 = vld [vmem:[#allocation2 + $0xa] sm:$0xff] }
  0xfd   : > { %1152 = vmatpush3.msra.mxu1 %v929_v16 }
  0xfe   : > { %v518_v19 = vld [vmem:[#allocation2] sm:$0xff]  ;;  %v519_v20 = vld [vmem:[#allocation2 + $0x8] sm:$0xff]  ;;  %1153 = vmatprep.subr.mxu1 %v928_v17 }
  0xff   : > { %v705_v21 = vld [vmem:[#allocation2 + $0x2] sm:$0xff]  ;;  %1144 = vmatprep.mubr.f32.mxu0 %v518_v19  ;;  %1154 = vmatpush3.msra.mxu1 %v928_v17 }
 0x100   : > { %1179 = vmatprep.mubr.f32.mxu1 %v705_v21  ;;  %1145 = vmatmul.mubr.f32.vlgmr.msra.gmra.mxu0 %v519_v20 }
 0x101   : > { %1155 = vmatprep.subr.mxu1 %v927_v18 }
 0x102   : > { %1156 = vmatpush3.msra.mxu1 %v927_v18 }
 0x103   : > { %1157 = vmatprep.subr.mxu1 %v926_v22 }
 0x104   : > { %1158 = vmatpush3.msra.mxu1 %v926_v22 }
 0x105   : > { %1159 = vmatprep.subr.mxu1 %v925_v23 }
 0x106   : > { %1160 = vmatpush3.msra.mxu1 %v925_v23 }
 0x107   : > { %1161 = vmatprep.subr.mxu1 %v924_v24 }
 0x108   : > { %1162 = vmatpush3.msra.mxu1 %v924_v24 }
 0x109   : > { %1163 = vmatprep.subr.mxu1 %v923_v25 }
 0x10a   : > { %1164 = vmatpush3.msra.mxu1 %v923_v25 }
 0x10b   : > { %1165 = vmatprep.subr.mxu1 %v922_v26 }
 0x10c   : > { %1166 = vmatpush3.msra.mxu1 %v922_v26 }
 0x10d   : > { %1167 = vmatprep.subr.mxu1 %v921_v27 }
 0x10e   : > { %1168 = vmatpush3.msra.mxu1 %v921_v27 }
 0x10f   : > { %1169 = vmatprep.subr.mxu1 %v920_v28 }
 0x110   : > { %1170 = vmatpush3.msra.mxu1 %v920_v28 }
 0x111   : > { %1171 = vmatprep.subr.mxu1 %v919_v29 }
 0x112   : > { %1172 = vmatpush3.msra.mxu1 %v919_v29 }
 0x113   : > { %1173 = vmatprep.subr.mxu1 %v918_v30 }
 0x114   : > { %1174 = vmatpush3.msra.mxu1 %v918_v30 }
 0x115   : > { %1175 = vmatprep.subr.mxu1 %v917_v31 }
 0x116   : > { %1176 = vmatpush3.msra.mxu1 %v917_v31 }
 0x117   : > { %1177 = vmatprep.subr.mxu1 %v916_v32 }
 0x118   : > { %1178 = vmatpush3.msra.mxu1 %v916_v32 }
 0x119   : > { %1180 = vmatmul.mubr.f32.vlgmr.msra.gmra.mxu1 %v706_v33 }
 0x1b8   : > { %v1111_v34 = vpop.f32.mrf.mxu1 }
 0x1ba   : > { %v621_v36 = vpop.f32.mrf.mxu1 }
 0x1c0   : > { %v1146_v35 = vpop.f32.mrf.mxu0 }
 0x1c1   : > { %v702_v38 = vadd.f32 %v1146_v35, %v1111_v34 }
 0x1c2   : > { %v696_v37 = vpop.f32.mrf.mxu0 }
 0x1c3   : > { %v697_v41 = vadd.f32 %v696_v37, %v621_v36 }
 0x1d9   : > { %v1181_v39 = vpop.f32.mrf.mxu1 }
 0x1da   : > { %v800_v42 = vadd.f32 %v1181_v39, %v702_v38 }
 0x1db   : > { %v790_v43 = vpop.f32.mrf.mxu1 }
 0x1dc   : > { %v809_v44 = vadd.f32 %v932_v40, %v800_v42  ;;  %v799_v45 = vadd.f32 %v790_v43, %v697_v41 }
 0x1de   : > { %v811_v46 = vmax.f32 %v809_v44, 0.0  ;;  %v808_v47 = vadd.f32 %v932_v40, %v799_v45 }
 0x1e0   : > { %813 = vst [vmem:[%s224_s12 + $0x8] sm:$0xff] %v811_v46  ;;  %v810_v48 = vmax.f32 %v808_v47, 0.0 }
 0x1e2   : > { %812 = vst [vmem:[%s224_s12] sm:$0xff] %v810_v48 }
 0x1e3 PF: > { %s15_s18 = sadd.s32 1, %s1198_s18  }
 0x1e4   : > { %p12_p4 = scmp.ge.s32.totalorder %s15_s18, 4  }
 0x1e6   :  { %14 = sbr.rel (!%p12_p4) target bundleno = 1 (0x1), region = 74 }

</bundles_post_ra>
